<compile_context>
chip_gen: v5e
topology: v5e:2x2
jax: 0.10.0
libtpu: 0.0.40
codegen_flags: <defaults>
</compile_context>

<pallas_src>
import functools

import jax
import jax.numpy as jnp
from jax.experimental import pallas as pl
from jax.experimental.pallas import tpu as pltpu


def _detect_vmem_limit():
    # Generation-aware VMEM budget: ~3/4 of per-core capacity, capped at 96 MiB
    # (v5e/v6e: 128 MiB physical -> 96 MiB; v7x: 64 MiB/TC -> 48 MiB).
    # Fall back to a conservative 32 MiB if the query is unavailable.
    try:
        cap = int(pltpu.get_tpu_info().vmem_capacity_bytes)
        return min(cap * 3 // 4, 96 * 1024 * 1024)
    except Exception:
        return 32 * 1024 * 1024


VMEM_LIMIT_BYTES = _detect_vmem_limit()


def _const_spec(arr):
    """Full-array block with a constant index map (weights/biases)."""
    shape = arr.shape
    nd = len(shape)
    # TODO(synk): pipeline_mode=pl.Buffered(1) would halve the VMEM held by these
    # constant blocks (free headroom on v7x); left at default to stay conservative.
    return pl.BlockSpec(shape, lambda *_: (0,) * nd)


def _mm(x, w_ref):
    """Matmul against a weight ref at the weight's dtype, fp32 accumulation."""
    w = w_ref[...]
    return jnp.dot(x.astype(w.dtype), w, preferred_element_type=jnp.float32)


# --------------------------------------------------------------------------
# Kernel A: GAC extractor (3 -> 64 -> 128 -> 256, ReLU on first two) fused with
# a single fused Q|K|V projection.  Grid: row tiles over B*N ("parallel").
# --------------------------------------------------------------------------
def _gac_qkv_kernel(x_ref,
                    w1, b1, w2, b2, w3, b3, wqkv, bqkv,
                    f_ref, qk_ref, v_ref):
    x = x_ref[...]  # (TM, 3)
    # NOTE: Cin=3 underutilizes the MXU; could be 3 VPU multiply-adds instead.
    h = jnp.maximum(_mm(x, w1) + b1[...], 0.0)
    h = jnp.maximum(_mm(h, w2) + b2[...], 0.0)
    f = _mm(h, w3) + b3[...]                      # (TM, 256) fp32
    f_ref[...] = f.astype(f_ref.dtype)
    qkv = _mm(f, wqkv) + bqkv[...]                # (TM, 2*Dq + D) fp32
    dqk = qk_ref.shape[-1]                        # 2*Dq (=128, lane-dense)
    qk_ref[...] = qkv[:, :dqk].astype(qk_ref.dtype)
    v_ref[...] = qkv[:, dqk:].astype(v_ref.dtype)


def gac_qkv(pc, gac_params, attn_params, *, compute_dtype, block_m=1024):
    B, N, _ = pc.shape
    M = B * N
    (w1, b1), (w2, b2), (w3, b3) = gac_params
    (wq, bq), (wk, bk), (wv, bv) = attn_params
    D = w3.shape[1]
    Dq = wq.shape[1]
    cd = jnp.dtype(compute_dtype)

    # Fold the 1/sqrt(Dq) softmax scale into the Q projection and fuse Q/K/V
    # into one matmul; Q+K packed into a single lane-dense 2*Dq (=128) slab.
    scale = 1.0 / (Dq ** 0.5)
    wqkv = jnp.concatenate([wq * scale, wk, wv], axis=1).astype(cd)
    bqkv = jnp.concatenate([bq * scale, bk, bv], axis=1)  # fp32 bias

    tm = min(block_m, M)
    grid = (pl.cdiv(M, tm),)
    x2d = pc.reshape(M, 3)

    def row_spec(c):
        return pl.BlockSpec((tm, c), lambda i: (i, 0))

    weights = (w1.astype(cd), b1, w2.astype(cd), b2, w3.astype(cd), b3,
               wqkv, bqkv)
    f2d, qk2d, v2d = pl.pallas_call(
        _gac_qkv_kernel,
        out_shape=(
            jax.ShapeDtypeStruct((M, D), cd),
            jax.ShapeDtypeStruct((M, 2 * Dq), cd),
            jax.ShapeDtypeStruct((M, D), cd),
        ),
        grid=grid,
        in_specs=[row_spec(3)] + [_const_spec(w) for w in weights],
        out_specs=(row_spec(D), row_spec(2 * Dq), row_spec(D)),
        compiler_params=pltpu.CompilerParams(
            dimension_semantics=("parallel",),
            vmem_limit_bytes=VMEM_LIMIT_BYTES),
    )(x2d, *weights)

    rs = lambda t: t.reshape(B, N, -1)
    return rs(f2d), rs(qk2d), rs(v2d)


# --------------------------------------------------------------------------
# Kernel B: flash attention (online softmax over KV tiles) + residual +
# PreInterpolation + upsampler MLP.  Grid: (B, Q tiles, KV tiles).
# --------------------------------------------------------------------------
def _attn_tail_kernel(f_ref, qkq_ref, qkk_ref, v_ref,
                      wi, bi, w1, b1, w2, b2, w3, b3,
                      o_ref,
                      m_sc, l_sc, acc_sc,
                      *, n_points, block_k, approx_recip):
    kv = pl.program_id(2)

    @pl.when(kv == 0)
    def _():
        m_sc[...] = jnp.full(m_sc.shape, -jnp.inf, dtype=m_sc.dtype)
        l_sc[...] = jnp.zeros(l_sc.shape, l_sc.dtype)
        acc_sc[...] = jnp.zeros(acc_sc.shape, acc_sc.dtype)

    dq = qkq_ref.shape[-1] // 2
    q = qkq_ref[0][:, :dq]      # (TQ, Dq) — already scaled by 1/sqrt(Dq)
    k = qkk_ref[0][:, dq:]      # (TK, Dq)
    v = v_ref[0]                # (TK, D)

    # Contract last dims directly (no explicit k.T / XLU transpose).
    s = jax.lax.dot_general(q, k, (((1,), (1,)), ((), ())),
                            preferred_element_type=jnp.float32)  # (TQ, TK)

    if n_points % block_k != 0:  # static: only compiled in when N is ragged
        key_row = kv * block_k + jax.lax.broadcasted_iota(jnp.int32, (1, block_k), 1)
        key_col = kv * block_k + jax.lax.broadcasted_iota(jnp.int32, (block_k, 1), 0)
        s = jnp.where(key_row < n_points, s, -jnp.inf)
        v = jnp.where(key_col < n_points, v, jnp.zeros((), v.dtype))

    m_prev = m_sc[...]                                           # (TQ, 1)
    m_new = jnp.maximum(m_prev, jnp.max(s, axis=-1, keepdims=True))
    alpha = jnp.exp(m_prev - m_new)
    p = jnp.exp(s - m_new)                                       # (TQ, TK)
    l_sc[...] = alpha * l_sc[...] + jnp.sum(p, axis=-1, keepdims=True)
    acc_sc[...] = alpha * acc_sc[...] + jnp.dot(
        p.astype(v.dtype), v, preferred_element_type=jnp.float32)
    m_sc[...] = m_new

    @pl.when(kv == pl.num_programs(2) - 1)
    def _():
        a = acc_sc[...] * pl.reciprocal(l_sc[...], approx=approx_recip)
        h = f_ref[0].astype(jnp.float32) + a
        h = _mm(h, wi) + bi[...]
        h = jnp.maximum(_mm(h, w1) + b1[...], 0.0)
        h = jnp.maximum(_mm(h, w2) + b2[...], 0.0)
        h = _mm(h, w3) + b3[...]
        o_ref[0] = h.astype(o_ref.dtype)


def attn_and_upsample(f, qk, v, interp_params, up_params, up_factor,
                      *, compute_dtype, block_q=512, block_k=512):
    B, N, D = f.shape
    Dqk = qk.shape[-1]
    wi, bi = interp_params
    (w1, b1), (w2, b2), (w3, b3) = up_params
    out_c = w3.shape[1]  # 3 * up_factor
    cd = jnp.dtype(compute_dtype)
    tq = min(block_q, N)
    tk = min(block_k, N)
    grid = (B, pl.cdiv(N, tq), pl.cdiv(N, tk))

    def q_spec(c):
        return pl.BlockSpec((1, tq, c), lambda b, qi, ki: (b, qi, 0))

    def kv_spec(c):
        return pl.BlockSpec((1, tk, c), lambda b, qi, ki: (b, ki, 0))
    # TODO(synk): on v5e (low HBM BW) pipeline_mode=pl.Buffered(3) on kv_spec can
    # help hide the K/V streaming DMA; left default for portability.

    weights = (wi.astype(cd), bi, w1.astype(cd), b1,
               w2.astype(cd), b2, w3.astype(cd), b3)
    approx = bool(cd == jnp.dtype(jnp.bfloat16))
    out = pl.pallas_call(
        functools.partial(_attn_tail_kernel, n_points=N, block_k=tk,
                          approx_recip=approx),
        out_shape=jax.ShapeDtypeStruct((B, N, out_c), jnp.float32),
        grid=grid,
        in_specs=[q_spec(D), q_spec(Dqk), kv_spec(Dqk), kv_spec(D)]
                 + [_const_spec(w) for w in weights],
        out_specs=pl.BlockSpec((1, tq, out_c), lambda b, qi, ki: (b, qi, 0)),
        scratch_shapes=[pltpu.VMEM((tq, 1), jnp.float32),
                        pltpu.VMEM((tq, 1), jnp.float32),
                        pltpu.VMEM((tq, D), jnp.float32)],
        compiler_params=pltpu.CompilerParams(
            dimension_semantics=("parallel", "parallel", "arbitrary"),
            vmem_limit_bytes=VMEM_LIMIT_BYTES),
    )(f, qk, qk, v, *weights)
    # matches torch: up.view(B, N * up_factor, 3)
    return out.reshape(B, N * up_factor, 3)


# --------------------------------------------------------------------------
# Kernel C: PointClassifier — per-point MLP + fused mean-pool + head.
# Grid: (B, N tiles); per-batch sum accumulated in VMEM scratch.
# --------------------------------------------------------------------------
def _classifier_kernel(pc_ref, w1, b1, w2, b2, w3, b3, wc, bc,
                       o_ref, sum_sc, *, n_points, block_n):
    n = pl.program_id(1)

    @pl.when(n == 0)
    def _():
        sum_sc[...] = jnp.zeros(sum_sc.shape, sum_sc.dtype)

    x = pc_ref[0]  # (TN, 3)
    h = jnp.maximum(_mm(x, w1) + b1[...], 0.0)
    h = jnp.maximum(_mm(h, w2) + b2[...], 0.0)
    feat = jnp.maximum(_mm(h, w3) + b3[...], 0.0)

    if n_points % block_n != 0:  # static: mask padded rows of the last tile
        row_ids = n * block_n + jax.lax.broadcasted_iota(jnp.int32, (block_n, 1), 0)
        feat = jnp.where(row_ids < n_points, feat, 0.0)

    sum_sc[...] += jnp.sum(feat, axis=0, keepdims=True)  # (1, D)

    @pl.when(n == pl.num_programs(1) - 1)
    def _():
        g = sum_sc[...] * (1.0 / n_points)
        o_ref[0] = (_mm(g, wc) + bc[...]).astype(o_ref.dtype)


def point_classifier(pc, params, *, compute_dtype, block_n=1024):
    B, N, _ = pc.shape
    mlp_params, (wc, bc) = params
    (w1, b1), (w2, b2), (w3, b3) = mlp_params
    num_classes = wc.shape[1]
    D = w3.shape[1]
    cd = jnp.dtype(compute_dtype)
    tn = min(block_n, N)
    grid = (B, pl.cdiv(N, tn))
    # NOTE(v7x megacore): only the B axis is "parallel"; for B==1 this runs on a
    # single TensorCore.  Acceptable — the classifier is a tiny fraction of SPU.

    weights = (w1.astype(cd), b1, w2.astype(cd), b2, w3.astype(cd), b3,
               wc.astype(cd), bc)
    logits3d = pl.pallas_call(
        functools.partial(_classifier_kernel, n_points=N, block_n=tn),
        out_shape=jax.ShapeDtypeStruct((B, 1, num_classes), jnp.float32),
        grid=grid,
        in_specs=[pl.BlockSpec((1, tn, 3), lambda b, n: (b, n, 0))]
                 + [_const_spec(w) for w in weights],
        out_specs=pl.BlockSpec((1, 1, num_classes), lambda b, n: (b, 0, 0)),
        scratch_shapes=[pltpu.VMEM((1, D), jnp.float32)],
        compiler_params=pltpu.CompilerParams(
            dimension_semantics=("parallel", "arbitrary"),
            vmem_limit_bytes=VMEM_LIMIT_BYTES),
    )(pc, *weights)
    return logits3d[:, 0, :]


# --------------------------------------------------------------------------
# Full SPU forward
# --------------------------------------------------------------------------
def spu_forward(pc, params, *, compute_dtype=jnp.bfloat16,
                block_m=1024, block_q=512, block_k=512, block_n=1024,
                run_initial_classifier=False):
    # The torch module computes cls_logits on `pc` but discards it; gate that
    # dead compute off by default (forward outputs are unchanged).
    if run_initial_classifier:
        _ = point_classifier(pc, params["classifier"],
                             compute_dtype=compute_dtype, block_n=block_n)
    current_pc = pc
    outputs = []
    for i in range(params["stages"]):
        st = params["stage"][i]
        f, qk, v = gac_qkv(current_pc, st["gac"], st["attn"],
                           compute_dtype=compute_dtype, block_m=block_m)
        current_pc = attn_and_upsample(f, qk, v, st["interp"], st["up"],
                                       params["up_factor"],
                                       compute_dtype=compute_dtype,
                                       block_q=block_q, block_k=block_k)
        outputs.append(current_pc)
    final_logits = point_classifier(current_pc, params["final_cls"],
                                    compute_dtype=compute_dtype, block_n=block_n)
    return current_pc, final_logits, outputs


# --------------------------------------------------------------------------
# Deterministic parameter init (PyTorch-style uniform(-1/sqrt(fan_in), ...))
# Weights stored as (Cin, Cout); biases as (1, Cout).  Stored fp32; the
# wrappers cast weights to the compute dtype at kernel boundaries.
# --------------------------------------------------------------------------
def linear_params(key, fan_in, fan_out):
    kw, kb = jax.random.split(key)
    bound = 1.0 / (fan_in ** 0.5)
    w = jax.random.uniform(kw, (fan_in, fan_out), jnp.float32, -bound, bound)
    b = jax.random.uniform(kb, (1, fan_out), jnp.float32, -bound, bound)
    return w, b


def init_params(key, num_classes=50, up_factor=2, stages=2):
    keys = iter(jax.random.split(key, 64))

    def cls_params():
        mlp = (
            linear_params(next(keys), 3, 64),
            linear_params(next(keys), 64, 128),
            linear_params(next(keys), 128, 256),
        )
        head = linear_params(next(keys), 256, num_classes)
        return (mlp, head)

    params = {
        "stages": stages,
        "up_factor": up_factor,
        "classifier": cls_params(),
        "final_cls": cls_params(),
        "stage": [],
    }
    for _ in range(stages):
        params["stage"].append(
            {
                "gac": (
                    linear_params(next(keys), 3, 64),
                    linear_params(next(keys), 64, 128),
                    linear_params(next(keys), 128, 256),
                ),
                "attn": (
                    linear_params(next(keys), 256, 64),
                    linear_params(next(keys), 256, 64),
                    linear_params(next(keys), 256, 256),
                ),
                "interp": linear_params(next(keys), 256, 256),
                "up": (
                    linear_params(next(keys), 256, 128),
                    linear_params(next(keys), 128, 64),
                    linear_params(next(keys), 64, 3 * up_factor),
                ),
            }
        )
    return params


# --------------------------------------------------------------------------
# Pure-JAX reference (for correctness check)
# --------------------------------------------------------------------------
def _ref_linear(x, p):
    w, b = p
    return x @ w + b[0]


def ref_spu(pc, params):
    def mlp3(x, ps, last_relu):
        p1, p2, p3 = ps
        h = jax.nn.relu(_ref_linear(x, p1))
        h = jax.nn.relu(_ref_linear(h, p2))
        h = _ref_linear(h, p3)
        return jax.nn.relu(h) if last_relu else h

    def classifier(x, ps):
        mlp_p, head = ps
        feat = mlp3(x, mlp_p, True)
        return _ref_linear(feat.mean(axis=1), head)

    def attention(f, ps):
        pq, pk, pv = ps
        q, k, v = _ref_linear(f, pq), _ref_linear(f, pk), _ref_linear(f, pv)
        scores = jnp.einsum("bnd,bmd->bnm", q, k) / (q.shape[-1] ** 0.5)
        attn = jax.nn.softmax(scores, axis=-1)
        return jnp.einsum("bnm,bmd->bnd", attn, v)

    _ = classifier(pc, params["classifier"])
    current = pc
    outs = []
    for st in params["stage"]:
        f = mlp3(current, st["gac"], False)
        a = attention(f, st["attn"])
        fi = _ref_linear(f + a, st["interp"])
        up = mlp3(fi, st["up"], False)
        B, N, _ = current.shape
        current = up.reshape(B, N * params["up_factor"], 3)
        outs.append(current)
    final_logits = classifier(current, params["final_cls"])
    return current, final_logits, outs


# --------------------------------------------------------------------------
if __name__ == "__main__":
    key = jax.random.PRNGKey(0)
    kx, kp = jax.random.split(key)

    B, N = 2, 24           # small point cloud (B, N, 3); N chosen to exercise
    num_classes, up_factor, stages = 50, 2, 2   # partial-tile masking paths

    pc = jax.random.normal(kx, (B, N, 3), jnp.float32)
    params = init_params(kp, num_classes=num_classes, up_factor=up_factor,
                         stages=stages)

    # Small tile sizes so the tiny test exercises the grids / masks; real runs
    # use the larger defaults (block_m=1024, block_q=block_k=512, block_n=1024).
    small = dict(block_m=32, block_q=16, block_k=16, block_n=64)

    r_pc, r_logits, r_outs = ref_spu(pc, params)

    # 1) fp32 compute path: exact-parity check against the fp32 reference.
    cur32, logits32, outs32 = spu_forward(
        pc, params, compute_dtype=jnp.float32, run_initial_classifier=True,
        **small)
    jax.block_until_ready((cur32, logits32, outs32))
    assert cur32.shape == (B, N * up_factor ** stages, 3)
    assert logits32.shape == (B, num_classes)
    assert jnp.allclose(cur32, r_pc, atol=5e-4, rtol=5e-4)
    assert jnp.allclose(logits32, r_logits, atol=5e-4, rtol=5e-4)
    for o, r in zip(outs32, r_outs):
        assert jnp.allclose(o, r, atol=5e-4, rtol=5e-4)

    # 2) default bf16 compute path (perf config): loose sanity check vs fp32 ref.
    cur16, logits16, outs16 = spu_forward(pc, params, **small)
    jax.block_until_ready((cur16, logits16, outs16))
    assert cur16.shape == (B, N * up_factor ** stages, 3)
    assert logits16.shape == (B, num_classes)
    assert bool(jnp.all(jnp.isfinite(cur16))) and bool(jnp.all(jnp.isfinite(logits16)))
    assert float(jnp.max(jnp.abs(cur16 - r_pc))) < 0.2
    assert float(jnp.max(jnp.abs(logits16 - r_logits))) < 0.2

    print("KERNEL_OK")
</pallas_src>

<mosaic_0001>
module attributes {stable_mosaic.version = 11 : i64} {
  func.func @_classifier_kernel(%arg0: i32, %arg1: i32, %arg2: memref<1x24x3xf32, #tpu.memory_space<vmem>>, %arg3: memref<3x64xf32, #tpu.memory_space<vmem>>, %arg4: memref<1x64xf32, #tpu.memory_space<vmem>>, %arg5: memref<64x128xf32, #tpu.memory_space<vmem>>, %arg6: memref<1x128xf32, #tpu.memory_space<vmem>>, %arg7: memref<128x256xf32, #tpu.memory_space<vmem>>, %arg8: memref<1x256xf32, #tpu.memory_space<vmem>>, %arg9: memref<256x50xf32, #tpu.memory_space<vmem>>, %arg10: memref<1x50xf32, #tpu.memory_space<vmem>>, %arg11: memref<1x1x50xf32, #tpu.memory_space<vmem>>, %arg12: memref<1x256xf32, #tpu.memory_space<vmem>>) attributes {dimension_semantics = [#tpu.dimension_semantics<parallel>, #tpu.dimension_semantics<arbitrary>], iteration_bounds = array<i64: 2, 1>, scalar_prefetch = 0 : i64, scratch_operands = 1 : i64, tpu.core_type = #tpu.core_type<tc>, window_params = [{transform_indices = @transform_0, window_bounds = array<i64: 1, 24, 3>}, {pipeline_mode = #tpu.pipeline_mode<synchronous>, transform_indices = @transform_1, window_bounds = array<i64: 3, 64>}, {pipeline_mode = #tpu.pipeline_mode<synchronous>, transform_indices = @transform_2, window_bounds = array<i64: 1, 64>}, {pipeline_mode = #tpu.pipeline_mode<synchronous>, transform_indices = @transform_3, window_bounds = array<i64: 64, 128>}, {pipeline_mode = #tpu.pipeline_mode<synchronous>, transform_indices = @transform_4, window_bounds = array<i64: 1, 128>}, {pipeline_mode = #tpu.pipeline_mode<synchronous>, transform_indices = @transform_5, window_bounds = array<i64: 128, 256>}, {pipeline_mode = #tpu.pipeline_mode<synchronous>, transform_indices = @transform_6, window_bounds = array<i64: 1, 256>}, {pipeline_mode = #tpu.pipeline_mode<synchronous>, transform_indices = @transform_7, window_bounds = array<i64: 256, 50>}, {pipeline_mode = #tpu.pipeline_mode<synchronous>, transform_indices = @transform_8, window_bounds = array<i64: 1, 50>}, {transform_indices = @transform_9, window_bounds = array<i64: 1, 1, 50>}]} {
    %c0_i32 = arith.constant 0 : i32
    %0 = arith.cmpi eq, %arg1, %c0_i32 : i32
    %1 = arith.extui %0 : i1 to i32
    %c0_i32_0 = arith.constant 0 : i32
    %2 = arith.cmpi ne, %1, %c0_i32_0 : i32
    scf.if %2 {
      %cst_27 = arith.constant 0.000000e+00 : f32
      %34 = vector.broadcast %cst_27 : f32 to vector<1x256xf32>
      %c0_28 = arith.constant 0 : index
      %c0_29 = arith.constant 0 : index
      %35 = vector.load %arg12[%c0_28, %c0_29] : memref<1x256xf32, #tpu.memory_space<vmem>>, vector<1x256xf32>
      tpu.vector_store %arg12[%c0_28, %c0_29], %34 {strides = array<i32>} : memref<1x256xf32, #tpu.memory_space<vmem>>, vector<1x256xf32>,
    } else {
    }
    %c0 = arith.constant 0 : index
    %c0_1 = arith.constant 0 : index
    %c0_2 = arith.constant 0 : index
    %3 = vector.load %arg2[%c0, %c0_1, %c0_2] : memref<1x24x3xf32, #tpu.memory_space<vmem>>, vector<1x24x3xf32>
    %4 = vector.shape_cast %3 : vector<1x24x3xf32> to vector<24x3xf32>
    %c0_3 = arith.constant 0 : index
    %c0_4 = arith.constant 0 : index
    %5 = vector.load %arg3[%c0_3, %c0_4] : memref<3x64xf32, #tpu.memory_space<vmem>>, vector<3x64xf32>
    %cst = arith.constant dense<0.000000e+00> : vector<24x64xf32>
    %6 = tpu.matmul %4, %5, %cst {dimension_numbers = #tpu.dot_dimension_numbers<[1], [0], [0], [1], [0, 0, 1, 1], [], []>} : vector<24x3xf32>, vector<3x64xf32>, vector<24x64xf32> -> vector<24x64xf32>
    %c0_5 = arith.constant 0 : index
    %c0_6 = arith.constant 0 : index
    %7 = vector.load %arg4[%c0_5, %c0_6] : memref<1x64xf32, #tpu.memory_space<vmem>>, vector<1x64xf32>
    %8 = vector.broadcast %7 : vector<1x64xf32> to vector<24x64xf32>
    %9 = arith.addf %6, %8 : vector<24x64xf32>
    %cst_7 = arith.constant 0.000000e+00 : f32
    %10 = vector.broadcast %cst_7 : f32 to vector<24x64xf32>
    %11 = arith.maximumf %9, %10 : vector<24x64xf32>
    %c0_8 = arith.constant 0 : index
    %c0_9 = arith.constant 0 : index
    %12 = vector.load %arg5[%c0_8, %c0_9] : memref<64x128xf32, #tpu.memory_space<vmem>>, vector<64x128xf32>
    %cst_10 = arith.constant dense<0.000000e+00> : vector<24x128xf32>
    %13 = tpu.matmul %11, %12, %cst_10 {dimension_numbers = #tpu.dot_dimension_numbers<[1], [0], [0], [1], [0, 0, 1, 1], [], []>} : vector<24x64xf32>, vector<64x128xf32>, vector<24x128xf32> -> vector<24x128xf32>
    %c0_11 = arith.constant 0 : index
    %c0_12 = arith.constant 0 : index
    %14 = vector.load %arg6[%c0_11, %c0_12] : memref<1x128xf32, #tpu.memory_space<vmem>>, vector<1x128xf32>
    %15 = vector.broadcast %14 : vector<1x128xf32> to vector<24x128xf32>
    %16 = arith.addf %13, %15 : vector<24x128xf32>
    %cst_13 = arith.constant 0.000000e+00 : f32
    %17 = vector.broadcast %cst_13 : f32 to vector<24x128xf32>
    %18 = arith.maximumf %16, %17 : vector<24x128xf32>
    %c0_14 = arith.constant 0 : index
    %c0_15 = arith.constant 0 : index
    %19 = vector.load %arg7[%c0_14, %c0_15] : memref<128x256xf32, #tpu.memory_space<vmem>>, vector<128x256xf32>
    %cst_16 = arith.constant dense<0.000000e+00> : vector<24x256xf32>
    %20 = tpu.matmul %18, %19, %cst_16 {dimension_numbers = #tpu.dot_dimension_numbers<[1], [0], [0], [1], [0, 0, 1, 1], [], []>} : vector<24x128xf32>, vector<128x256xf32>, vector<24x256xf32> -> vector<24x256xf32>
    %c0_17 = arith.constant 0 : index
    %c0_18 = arith.constant 0 : index
    %21 = vector.load %arg8[%c0_17, %c0_18] : memref<1x256xf32, #tpu.memory_space<vmem>>, vector<1x256xf32>
    %22 = vector.broadcast %21 : vector<1x256xf32> to vector<24x256xf32>
    %23 = arith.addf %20, %22 : vector<24x256xf32>
    %cst_19 = arith.constant 0.000000e+00 : f32
    %24 = vector.broadcast %cst_19 : f32 to vector<24x256xf32>
    %25 = arith.maximumf %23, %24 : vector<24x256xf32>
    %c0_20 = arith.constant 0 : index
    %c0_21 = arith.constant 0 : index
    %26 = vector.load %arg12[%c0_20, %c0_21] : memref<1x256xf32, #tpu.memory_space<vmem>>, vector<1x256xf32>
    %cst_22 = arith.constant dense<0.000000e+00> : vector<256xf32>
    %27 = vector.multi_reduction <add>, %25, %cst_22 [0] : vector<24x256xf32> to vector<256xf32>
    %28 = vector.shape_cast %27 : vector<256xf32> to vector<1x256xf32>
    %29 = arith.addf %26, %28 : vector<1x256xf32>
    %c0_23 = arith.constant 0 : index
    %c0_24 = arith.constant 0 : index
    %30 = vector.load %arg12[%c0_23, %c0_24] : memref<1x256xf32, #tpu.memory_space<vmem>>, vector<1x256xf32>
    tpu.vector_store %arg12[%c0_23, %c0_24], %29 {strides = array<i32>} : memref<1x256xf32, #tpu.memory_space<vmem>>, vector<1x256xf32>,
    %c0_i32_25 = arith.constant 0 : i32
    %31 = arith.cmpi eq, %arg1, %c0_i32_25 : i32
    %32 = arith.extui %31 : i1 to i32
    %c0_i32_26 = arith.constant 0 : i32
    %33 = arith.cmpi ne, %32, %c0_i32_26 : i32
    scf.if %33 {
      %c0_27 = arith.constant 0 : index
      %c0_28 = arith.constant 0 : index
      %34 = vector.load %arg12[%c0_27, %c0_28] : memref<1x256xf32, #tpu.memory_space<vmem>>, vector<1x256xf32>
      %cst_29 = arith.constant 0.0416666679 : f32
      %35 = vector.broadcast %cst_29 : f32 to vector<1x256xf32>
      %36 = arith.mulf %34, %35 : vector<1x256xf32>
      %c0_30 = arith.constant 0 : index
      %c0_31 = arith.constant 0 : index
      %37 = vector.load %arg9[%c0_30, %c0_31] : memref<256x50xf32, #tpu.memory_space<vmem>>, vector<256x50xf32>
      %cst_32 = arith.constant dense<0.000000e+00> : vector<1x50xf32>
      %38 = tpu.matmul %36, %37, %cst_32 {dimension_numbers = #tpu.dot_dimension_numbers<[1], [0], [0], [1], [0, 0, 1, 1], [], []>} : vector<1x256xf32>, vector<256x50xf32>, vector<1x50xf32> -> vector<1x50xf32>
      %c0_33 = arith.constant 0 : index
      %c0_34 = arith.constant 0 : index
      %39 = vector.load %arg10[%c0_33, %c0_34] : memref<1x50xf32, #tpu.memory_space<vmem>>, vector<1x50xf32>
      %40 = arith.addf %38, %39 : vector<1x50xf32>
      %c0_35 = arith.constant 0 : index
      %c0_36 = arith.constant 0 : index
      %c0_37 = arith.constant 0 : index
      %41 = vector.load %arg11[%c0_35, %c0_36, %c0_37] : memref<1x1x50xf32, #tpu.memory_space<vmem>>, vector<1x1x50xf32>
      %42 = vector.shape_cast %41 : vector<1x1x50xf32> to vector<1x50xf32>
      %43 = vector.shape_cast %40 : vector<1x50xf32> to vector<1x1x50xf32>
      tpu.vector_store %arg11[%c0_35, %c0_36, %c0_37], %43 {strides = array<i32>} : memref<1x1x50xf32, #tpu.memory_space<vmem>>, vector<1x1x50xf32>,
    } else {
    }
    return
  }
  func.func @transform_0(%arg0: i32, %arg1: i32) -> (i32, i32, i32) {
    %c0_i32 = arith.constant 0 : i32
    %c0_i32_0 = arith.constant 0 : i32
    return %arg0, %arg1, %c0_i32 : i32, i32, i32
  }
  func.func @transform_1(%arg0: i32, %arg1: i32) -> (i32, i32) {
    %c0_i32 = arith.constant 0 : i32
    %c0_i32_0 = arith.constant 0 : i32
    %c0_i32_1 = arith.constant 0 : i32
    return %c0_i32, %c0_i32_0 : i32, i32
  }
  func.func @transform_2(%arg0: i32, %arg1: i32) -> (i32, i32) {
    %c0_i32 = arith.constant 0 : i32
    %c0_i32_0 = arith.constant 0 : i32
    %c0_i32_1 = arith.constant 0 : i32
    return %c0_i32, %c0_i32_0 : i32, i32
  }
  func.func @transform_3(%arg0: i32, %arg1: i32) -> (i32, i32) {
    %c0_i32 = arith.constant 0 : i32
    %c0_i32_0 = arith.constant 0 : i32
    %c0_i32_1 = arith.constant 0 : i32
    return %c0_i32, %c0_i32_0 : i32, i32
  }
  func.func @transform_4(%arg0: i32, %arg1: i32) -> (i32, i32) {
    %c0_i32 = arith.constant 0 : i32
    %c0_i32_0 = arith.constant 0 : i32
    %c0_i32_1 = arith.constant 0 : i32
    return %c0_i32, %c0_i32_0 : i32, i32
  }
  func.func @transform_5(%arg0: i32, %arg1: i32) -> (i32, i32) {
    %c0_i32 = arith.constant 0 : i32
    %c0_i32_0 = arith.constant 0 : i32
    %c0_i32_1 = arith.constant 0 : i32
    return %c0_i32, %c0_i32_0 : i32, i32
  }
  func.func @transform_6(%arg0: i32, %arg1: i32) -> (i32, i32) {
    %c0_i32 = arith.constant 0 : i32
    %c0_i32_0 = arith.constant 0 : i32
    %c0_i32_1 = arith.constant 0 : i32
    return %c0_i32, %c0_i32_0 : i32, i32
  }
  func.func @transform_7(%arg0: i32, %arg1: i32) -> (i32, i32) {
    %c0_i32 = arith.constant 0 : i32
    %c0_i32_0 = arith.constant 0 : i32
    %c0_i32_1 = arith.constant 0 : i32
    return %c0_i32, %c0_i32_0 : i32, i32
  }
  func.func @transform_8(%arg0: i32, %arg1: i32) -> (i32, i32) {
    %c0_i32 = arith.constant 0 : i32
    %c0_i32_0 = arith.constant 0 : i32
    %c0_i32_1 = arith.constant 0 : i32
    return %c0_i32, %c0_i32_0 : i32, i32
  }
  func.func @transform_9(%arg0: i32, %arg1: i32) -> (i32, i32, i32) {
    %c0_i32 = arith.constant 0 : i32
    %c0_i32_0 = arith.constant 0 : i32
    %c0_i32_1 = arith.constant 0 : i32
    return %arg0, %c0_i32, %c0_i32_0 : i32, i32, i32
  }
}

</mosaic_0001>

<bundles_post_ra>
// kernel: tpu_custom_call.1
= control target key start
LH: loop header
LB: loop body
LE: loop exit
PB: predicated region body
PF: predicated region fallthrough
CT: control target
= control target key end

     0   :  { %s1305_s0 = inlined_call_operand.vmem [shape: f32[2,24,3], index: 0, kind: input, shape index: {}]   ;;  %s1306_s1 = inlined_call_operand.vmem [shape: f32[3,64], index: 1, kind: input, shape index: {}]   ;;  %s1307_s2 = inlined_call_operand.vmem [shape: f32[1,64], index: 2, kind: input, shape index: {}]   ;;  %s1308_s3 = inlined_call_operand.vmem [shape: f32[64,128], index: 3, kind: input, shape index: {}]   ;;  %s1309_s4 = inlined_call_operand.vmem [shape: f32[1,128], index: 4, kind: input, shape index: {}]   ;;  %s1310_s5 = inlined_call_operand.vmem [shape: f32[128,256], index: 5, kind: input, shape index: {}]   ;;  %s1311_s6 = inlined_call_operand.vmem [shape: f32[1,256], index: 6, kind: input, shape index: {}]   ;;  %s1312_s7 = inlined_call_operand.vmem [shape: f32[256,50], index: 7, kind: input, shape index: {}]   ;;  %s1313_s8 = inlined_call_operand.vmem [shape: f32[1,50], index: 8, kind: input, shape index: {}]   ;;  %s1314_s9 = inlined_call_operand.hbm [shape: f32[2,1,50], index: 9, kind: output, shape index: {}]  }
   0x1   :  { %1315 = sst [smem:[#allocation6_spill]] %s1306_s1 }
   0x2   :  { %14 = vsyncpa [#allocation4], 0 }
   0x3   :  { %16 = vsyncpa [#allocation4 + $0x1], 0  ;;  %s966_s30 = smov 0   ;;  %s968_s10 = smov 0  }
   0x4   :  { %s970_s11 = smov 0   ;;  %s972_s12 = smov 0  }
   0x5   :  { %s974_s13 = smov 0   ;;  %s976_s14 = smov 0  }
   0x6 LB: > { %s761_s15 = sadd.s32 4294967295, %s913_s14   ;;  %s762_s16 = sadd.s32 4294967294, %s913_s14   ;;  %s913_s14 = sphi %s976_s14, %s22_s14   ;;  %s909_s13 = sphi %s974_s13, %s1325_s13   ;;  %s905_s12 = sphi %s972_s12, %s1324_s12   ;;  %s901_s11 = sphi %s970_s11, %s1323_s11   ;;  %s897_s10 = sphi %s968_s10, %s1322_s10   ;;  %s893_s30 = sphi %s966_s30, %s1321_s30  }
   0x7   : > { %s34_s17 = sadd.s32 1, %s909_s13  ;;  %s237_s18 = sadd.s32 1, %s901_s11 }
   0x8   : > { %p36_p0 = scmp.ge.s32.totalorder %s34_s17, 2  ;;  %p247_p1 = scmp.ne.s32.totalorder %s901_s11, %s897_s10 }
   0x9   : > { %p248_p2 = scmp.eq.s32.totalorder %s761_s15, 1  ;;  %p253_p3 = scmp.ne.s32.totalorder %s897_s10, %s893_s30 }
   0xa   : > { %s1327_s17 = smov (%p36_p0, %s34_s17), 0  ;;  %p254_p5 = scmp.eq.s32.totalorder %s762_s16, 1 }
   0xb   : > { %p1006_p4 = por %p248_p2, %p247_p1  ;;  %s234_s20 = ssub.s32 %s909_s13, %s1327_s17 }
   0xc   : > { %p765_p6 = scmp.ge.s32.totalorder %s913_s14, 1  ;;  %p235_p7 = scmp.eq.s32.totalorder %s234_s20, 0 }
   0xd   : > { %p1013_p8 = por %p254_p5, %p253_p3  ;;  %p309_p9 = scmp.lt.s32.totalorder %s913_s14, 3 }
   0xe   : > { %s1019_s22 = scalar_select %p235_p7, %s901_s11, %s237_s18  }
   0xf   : > { %p310_p10 = pnand %p765_p6, %p309_p9 }
  0x10   : > { %s1318_s1 = sld [smem:[#allocation6_spill]] (!%p310_p10)  ;;  %p349_p11 = scmp.lt.s32.totalorder (!%p310_p10), %s905_s12, 1 }
  0x11   : > { %313 = sbr.rel (%p310_p10) target bundleno = 604 (0x25c), region = 56  ;;  %s346_s24 = sand.u32 (!%p310_p10), 1, %s897_s10  }
  0x12   : > { %s688_s27 = scalar_lea.hbm (!%p310_p10), %s1314_s9, %s905_s12  ;;  %s347_s15 = scalar_lea.vmem (!%p310_p10), [#allocation3], %s346_s24 }
  0x13   : > { %s690_s16 = sshll.u32 (!%p310_p10), %s347_s15, 4  ;;  %s691_s16 = int_to_ptr.vmem [resolvable:$true] %s690_s16 }
  0x16   : > { %v370_v0 = vld [vmem:[%s1318_s1] sm:$0x7]  ;;  %vm385_vm0 = vcmask 1042432   ;;  %v425_v1 = vld [vmem:[%s1308_s3 + $0x38] sm:$0xff]  ;;  %v424_v2 = vld [vmem:[%s1308_s3 + $0x30] sm:$0xff]  ;;  %s350_s29 = scalar_select %p349_p11, %s905_s12, 1 }
  0x17   : > { %767 = vmatpush.msk.msra.mxu0 %vm385_vm0, %v370_v0  ;;  %448 = vmatpush.msra.mxu1 %v425_v1  ;;  %v423_v3 = vld [vmem:[%s1308_s3 + $0x28] sm:$0xff]  ;;  %v422_v4 = vld [vmem:[%s1308_s3 + $0x20] sm:$0xff]  ;;  %vm375_vm1 = vcmask 23552   ;;  %v421_v5 = vld [vmem:[%s1308_s3 + $0x18] sm:$0xff]  ;;  %vm430_vm2 = vcmask 523264   ;;  %vm585_vm4 = vcmask 1040384  }
  0x18   : > { %s776_s18 = smul.u32 24, %s350_s29  ;;  %v420_v9 = vld [vmem:[%s1308_s3 + $0x10] sm:$0xff]  ;;  %v419_v10 = vld [vmem:[%s1308_s3 + $0x8] sm:$0xff]  ;;  %v418_v11 = vld [vmem:[%s1308_s3] sm:$0xff]  ;;  %s692_s1 = sshll.u32 %s688_s27, 4  ;;  %vm677_vm5 = vcmask 401408   ;;  %s693_s1 = int_to_ptr.hbm [resolvable:$true] %s692_s1 }
  0x19   : > { %449 = vmatpush.msra.mxu1 %v424_v2  ;;  %v499_v12 = vld [vmem:[%s1310_s5 + $0xf0] sm:$0xff]  ;;  %v500_v13 = vld [vmem:[%s1310_s5 + $0xf8] sm:$0xff]  ;;  %v497_v14 = vld [vmem:[%s1310_s5 + $0xe0] sm:$0xff]  ;;  %s849_s20 = sshra.s32 %s693_s1, 4  ;;  %s850_s20 = int_to_ptr.hbm [resolvable:$true] %s849_s20 }
  0x1a   : > { %s356_s26 = scalar_lea.vmem %s1305_s0, %s776_s18  ;;  %507 = vmatpush.msra.mxu2 %v499_v12  ;;  %533 = vmatpush.msra.mxu3 %v500_v13  ;;  %v498_v15 = vld [vmem:[%s1310_s5 + $0xe8] sm:$0xff]  ;;  %v495_v16 = vld [vmem:[%s1310_s5 + $0xd0] sm:$0xff]  ;;  %v496_v17 = vld [vmem:[%s1310_s5 + $0xd8] sm:$0xff]  ;;  %v915_v12 = vmov 0.0   ;;  %s680_s18 = scalar_lea.sflag [#allocation4], %s346_s24 }
  0x1b   : > { %450 = vmatpush.msra.mxu1 %v423_v3  ;;  %v367_v6 = vld [vmem:[%s356_s26] sm:$0xff]  ;;  %v368_v7 = vld [vmem:[%s356_s26 + $0x8] sm:$0xff]  ;;  %v369_v8 = vld [vmem:[%s356_s26 + $0x10] sm:$0xff]  ;;  %s851_s12 = scalar_lea.hbm %s850_s20, 1  ;;  %s855_s26 = scalar_lea.hbm %s1314_s9, 2 }
  0x1c   : > { %768 = vmatmul.msk.f32.vlgmr.msra.gmra.mxu0 %vm375_vm1, %v367_v6  ;;  %508 = vmatpush.msra.mxu2 %v497_v14  ;;  %v493_v18 = vld [vmem:[%s1310_s5 + $0xc0] sm:$0xff]  ;;  %v494_v19 = vld [vmem:[%s1310_s5 + $0xc8] sm:$0xff]  ;;  %v491_v20 = vld [vmem:[%s1310_s5 + $0xb0] sm:$0xff]  ;;  %p852_p12 = scmp.ne.s32.totalorder %s850_s20, %s851_s12  ;;  %p856_p1 = scmp.lt.s32.totalorder %s850_s20, %s1314_s9 }
  0x1d   : > { %451 = vmatpush.msra.mxu1 %v422_v4  ;;  %534 = vmatpush.msra.mxu3 %v498_v15  ;;  %v492_v21 = vld [vmem:[%s1310_s5 + $0xb8] sm:$0xff]  ;;  %v833_v22 = vld [vmem:[%s1307_s2] ss:$0 sm:$0xff]  ;;  %v490_v24 = vld [vmem:[%s1310_s5 + $0xa8] sm:$0xff]  ;;  %p857_p2 = scmp.lt.s32.totalorder %s855_s26, %s851_s12 }
  0x1e   : > { %509 = vmatpush.msra.mxu2 %v495_v16  ;;  %v489_v23 = vld [vmem:[%s1310_s5 + $0xa0] sm:$0xff]  ;;  %v487_v25 = vld [vmem:[%s1310_s5 + $0x90] sm:$0xff]  ;;  %v488_v26 = vld [vmem:[%s1310_s5 + $0x98] sm:$0xff]  ;;  %p853_p13 = pnand %p852_p12, %p1006_p4 }
  0x1f   : > { %452 = vmatpush.msra.mxu1 %v421_v5  ;;  %535 = vmatpush.msra.mxu3 %v496_v17  ;;  %v485_v29 = vld [vmem:[%s1310_s5 + $0x80] sm:$0xff]  ;;  %v486_v30 = vld [vmem:[%s1310_s5 + $0x88] sm:$0xff]  ;;  %v483_v32 = vld [vmem:[%s1310_s5 + $0x70] sm:$0xff]  ;;  %p858_p3 = por %p857_p2, %p856_p1 }
  0x20   : > { %510 = vmatpush.msra.mxu2 %v493_v18  ;;  %v484_v33 = vld [vmem:[%s1310_s5 + $0x78] sm:$0xff]  ;;  %v481_v34 = vld [vmem:[%s1310_s5 + $0x60] sm:$0xff]  ;;  %v482_v35 = vld [vmem:[%s1310_s5 + $0x68] sm:$0xff]  ;;  %p854_p0 = pneg %p853_p13 }
  0x21   : > { %453 = vmatpush.msra.mxu1 %v420_v9  ;;  %536 = vmatpush.msra.mxu3 %v494_v19  ;;  %v479_v36 = vld [vmem:[%s1310_s5 + $0x50] sm:$0xff]  ;;  %v480_v37 = vld [vmem:[%s1310_s5 + $0x58] sm:$0xff]  ;;  %v477_v40 = vld [vmem:[%s1310_s5 + $0x40] sm:$0xff] }
  0x22   : > { %511 = vmatpush.msra.mxu2 %v491_v20  ;;  %v478_v41 = vld [vmem:[%s1310_s5 + $0x48] sm:$0xff]  ;;  %v475_v43 = vld [vmem:[%s1310_s5 + $0x30] sm:$0xff]  ;;  %v476_v44 = vld [vmem:[%s1310_s5 + $0x38] sm:$0xff]  ;;  %p859_p5 = pnand %p858_p3, %p854_p0 }
  0x23   : > { %454 = vmatpush.msra.mxu1 %v419_v10  ;;  %537 = vmatpush.msra.mxu3 %v492_v21  ;;  %v473_v48 = vld [vmem:[%s1310_s5 + $0x20] sm:$0xff]  ;;  %v474_v49 = vld [vmem:[%s1310_s5 + $0x28] sm:$0xff]  ;;  %v471_v50 = vld [vmem:[%s1310_s5 + $0x10] sm:$0xff] }
  0x24   : > { %769 = vmatmul.msk.f32.gmra.mxu0 %vm375_vm1, %v368_v7  ;;  %512 = vmatpush.msra.mxu2 %v489_v23  ;;  %v472_v51 = vld [vmem:[%s1310_s5 + $0x18] sm:$0xff]  ;;  %v469_v52 = vld [vmem:[%s1310_s5] sm:$0xff]  ;;  %v470_v53 = vld [vmem:[%s1310_s5 + $0x8] sm:$0xff] }
  0x25   : > { %455 = vmatpush.msra.mxu1 %v418_v11  ;;  %538 = vmatpush.msra.mxu3 %v490_v24  ;;  %v834_v54 = vld [vmem:[%s1309_s4] ss:$0 sm:$0xff]  ;;  %v614_v0 = vld [vmem:[%s1312_s7 + $0x78] sm:$0xff]  ;;  %v613_v2 = vld [vmem:[%s1312_s7 + $0x70] sm:$0xff] }
  0x26   : > { %513 = vmatpush.msra.mxu2 %v487_v25  ;;  %v630_v1 = vld [vmem:[%s1312_s7 + $0xf8] sm:$0xff]  ;;  %637 = vmatpush.msrb.mxu0 %v614_v0  ;;  %v629_v3 = vld [vmem:[%s1312_s7 + $0xf0] sm:$0xff]  ;;  %v612_v4 = vld [vmem:[%s1312_s7 + $0x68] sm:$0xff] }
  0x27   : > { %539 = vmatpush.msra.mxu3 %v488_v26  ;;  %657 = vmatpush.msrb.mxu1 %v630_v1  ;;  %v628_v5 = vld [vmem:[%s1312_s7 + $0xe8] sm:$0xff]  ;;  %v611_v6 = vld [vmem:[%s1312_s7 + $0x60] sm:$0xff]  ;;  %v610_v9 = vld [vmem:[%s1312_s7 + $0x58] sm:$0xff] }
  0x28   : > { %514 = vmatpush.msra.mxu2 %v485_v29  ;;  %638 = vmatpush.msrb.mxu0 %v613_v2  ;;  %v627_v7 = vld [vmem:[%s1312_s7 + $0xe0] sm:$0xff]  ;;  %v626_v10 = vld [vmem:[%s1312_s7 + $0xd8] sm:$0xff]  ;;  %v609_v13 = vld [vmem:[%s1312_s7 + $0x50] sm:$0xff] }
  0x29   : > { %540 = vmatpush.msra.mxu3 %v486_v30  ;;  %658 = vmatpush.msrb.mxu1 %v629_v3  ;;  %v625_v14 = vld [vmem:[%s1312_s7 + $0xd0] sm:$0xff]  ;;  %v608_v17 = vld [vmem:[%s1312_s7 + $0x48] sm:$0xff]  ;;  %v607_v19 = vld [vmem:[%s1312_s7 + $0x40] sm:$0xff] }
  0x2a   : > { %515 = vmatpush.msra.mxu2 %v483_v32  ;;  %639 = vmatpush.msrb.mxu0 %v612_v4  ;;  %v624_v18 = vld [vmem:[%s1312_s7 + $0xc8] sm:$0xff]  ;;  %v623_v20 = vld [vmem:[%s1312_s7 + $0xc0] sm:$0xff]  ;;  %v606_v21 = vld [vmem:[%s1312_s7 + $0x38] sm:$0xff] }
  0x2b   : > { %541 = vmatpush.msra.mxu3 %v484_v33  ;;  %659 = vmatpush.msrb.mxu1 %v628_v5  ;;  %v501_v23 = vld [vmem:[%s1311_s6] sm:$0x3]  ;;  %v605_v24 = vld [vmem:[%s1312_s7 + $0x30] sm:$0xff]  ;;  %v620_v29 = vld [vmem:[%s1312_s7 + $0xa8] sm:$0xff] }
  0x2c   : > { %770 = vmatmul.msk.f32.gmra.mxu0 %vm375_vm1, %v369_v8  ;;  %516 = vmatpush.msra.mxu2 %v481_v34  ;;  %v362_v8 = vlaneseq  ;;  %v621_v25 = vld [vmem:[%s1312_s7 + $0xb0] sm:$0xff]  ;;  %v603_v30 = vld [vmem:[%s1312_s7 + $0x20] sm:$0xff]  ;;  %v504_v32 = vperm.slane %v501_v23, 1  ;;  %v602_v34 = vld [vmem:[%s1312_s7 + $0x18] sm:$0xff] }
  0x2d   : > { %542 = vmatpush.msra.mxu3 %v482_v35  ;;  %640 = vmatpush.msrb.mxu0 %v611_v6  ;;  %v619_v33 = vld [vmem:[%s1312_s7 + $0xa0] sm:$0xff]  ;;  %v618_v35 = vld [vmem:[%s1312_s7 + $0x98] sm:$0xff] }
  0x2e   : > { %517 = vmatpush.msra.mxu2 %v479_v36  ;;  %660 = vmatpush.msrb.mxu1 %v627_v7  ;;  %vm1188_vm3 = vcmp.lt.s32.totalorder %v362_v8, 256 }
  0x2f   : > { %543 = vmatpush.msra.mxu3 %v480_v37  ;;  %641 = vmatpush.msrb.mxu0 %v610_v9  ;;  %366 = vst.msk [vmem:[#allocation2] sm:$0x3] %vm1188_vm3, %v915_v12 }
  0x30   : > { %518 = vmatpush.msra.mxu2 %v477_v40  ;;  %661 = vmatpush.msrb.mxu1 %v626_v10 }
  0x31   : > { %544 = vmatpush.msra.mxu3 %v478_v41  ;;  %642 = vmatpush.msrb.mxu0 %v609_v13 }
  0x32   : > { %519 = vmatpush.msra.mxu2 %v475_v43  ;;  %662 = vmatpush.msrb.mxu1 %v625_v14  ;;  %v616_v43 = vld [vmem:[%s1312_s7 + $0x88] sm:$0xff] }
  0x33   : > { %545 = vmatpush.msra.mxu3 %v476_v44  ;;  %643 = vmatpush.msrb.mxu0 %v608_v17  ;;  %v631_v17 = vld [vmem:[%s1313_s8] sm:$0x1] }
  0x34   : > { %520 = vmatpush.msra.mxu2 %v473_v48  ;;  %663 = vmatpush.msrb.mxu1 %v624_v18  ;;  %v599_v48 = vld [vmem:[%s1312_s7] sm:$0xff] }
  0x35   : > { %546 = vmatpush.msra.mxu3 %v474_v49  ;;  %644 = vmatpush.msrb.mxu0 %v607_v19  ;;  %v615_v49 = vld [vmem:[%s1312_s7 + $0x80] sm:$0xff] }
  0x36   : > { %521 = vmatpush.msra.mxu2 %v471_v50  ;;  %664 = vmatpush.msrb.mxu1 %v623_v20  ;;  %v565_v8 = vld [vmem:[#allocation2] sm:$0x3] }
  0x37   : > { %547 = vmatpush.msra.mxu3 %v472_v51  ;;  %645 = vmatpush.msrb.mxu0 %v606_v21 }
  0x38   : > { %522 = vmatpush.msra.mxu2 %v469_v52 }
  0x39   : > { %548 = vmatpush.msra.mxu3 %v470_v53  ;;  %646 = vmatpush.msrb.mxu0 %v605_v24 }
  0x99   : > { %v406_v27 = vpop.f32.mrf.mxu0 }
  0x9a   : > { %v407_v28 = vadd.f32 %v833_v22, %v406_v27 }
  0x9c   : > { %v415_v31 = vmax.f32 %v407_v28, 0.0  ;;  %v604_v28 = vld [vmem:[%s1312_s7 + $0x28] sm:$0xff] }
  0x9d   : > { %647 = vmatpush.msrb.mxu0 %v604_v28 }
  0x9e   : > { %771 = vmatmul.msk.f32.vlgmr.msra.gmra.mxu1 %vm430_vm2, %v415_v31  ;;  %v503_v31 = vperm.slane %v501_v23, 0 }
  0x9f   : > { %648 = vmatpush.msrb.mxu0 %v603_v30 }
  0xa1   : > { %v409_v38 = vpop.f32.mrf.mxu0  ;;  %649 = vmatpush.msrb.mxu0 %v602_v34 }
  0xa2   : > { %v410_v39 = vadd.f32 %v833_v22, %v409_v38  ;;  %v601_v38 = vld [vmem:[%s1312_s7 + $0x10] sm:$0xff] }
  0xa3   : > { %650 = vmatpush.msrb.mxu0 %v601_v38 }
  0xa4   : > { %v416_v42 = vmax.f32 %v410_v39, 0.0  ;;  %v617_v39 = vld [vmem:[%s1312_s7 + $0x90] sm:$0xff] }
  0xa6   : > { %772 = vmatmul.msk.f32.gmra.mxu1 %vm430_vm2, %v416_v42  ;;  %v600_v42 = vld [vmem:[%s1312_s7 + $0x8] sm:$0xff] }
  0xa7   : > { %651 = vmatpush.msrb.mxu0 %v600_v42 }
  0xa9   : > { %v412_v45 = vpop.f32.mrf.mxu0  ;;  %652 = vmatpush.msrb.mxu0 %v599_v48 }
  0xaa   : > { %v413_v46 = vadd.f32 %v833_v22, %v412_v45  ;;  %v622_v22 = vld [vmem:[%s1312_s7 + $0xb8] sm:$0xff] }
  0xab   : > { %665 = vmatpush.msrb.mxu1 %v622_v22 }
  0xac   : > { %v417_v47 = vmax.f32 %v413_v46, 0.0 }
  0xad   : > { %666 = vmatpush.msrb.mxu1 %v621_v25 }
  0xae   : > { %773 = vmatmul.msk.f32.gmra.mxu1 %vm430_vm2, %v417_v47 }
  0xaf   : > { %667 = vmatpush.msrb.mxu1 %v620_v29 }
  0xb1   : > { %668 = vmatpush.msrb.mxu1 %v619_v33 }
  0xb3   : > { %669 = vmatpush.msrb.mxu1 %v618_v35 }
  0xb5   : > { %670 = vmatpush.msrb.mxu1 %v617_v39 }
  0xb7   : > { %671 = vmatpush.msrb.mxu1 %v616_v43 }
  0xb9   : > { %672 = vmatpush.msrb.mxu1 %v615_v49 }
 0x11b   : > { %v457_v55 = vpop.f32.mrf.mxu1 }
 0x11c   : > { %v458_v56 = vadd.f32 %v834_v54, %v457_v55 }
 0x11e   : > { %v466_v57 = vmax.f32 %v458_v56, 0.0 }
 0x120   : > { %523 = vmatmul.f32.vlgmr.msra.gmra.mxu2 %v466_v57  ;;  %549 = vmatmul.f32.vlgmr.msra.gmra.mxu3 %v466_v57 }
 0x123   : > { %v460_v58 = vpop.f32.mrf.mxu1 }
 0x124   : > { %v461_v59 = vadd.f32 %v834_v54, %v460_v58 }
 0x126   : > { %v467_v60 = vmax.f32 %v461_v59, 0.0 }
 0x128   : > { %526 = vmatmul.f32.gmra.mxu2 %v467_v60  ;;  %552 = vmatmul.f32.gmra.mxu3 %v467_v60 }
 0x12b   : > { %v463_v61 = vpop.f32.mrf.mxu1 }
 0x12c   : > { %v464_v62 = vadd.f32 %v834_v54, %v463_v61 }
 0x12e   : > { %v468_v63 = vmax.f32 %v464_v62, 0.0 }
 0x130   : > { %529 = vmatmul.f32.gmra.mxu2 %v468_v63  ;;  %555 = vmatmul.f32.gmra.mxu3 %v468_v63 }
 0x1a3   : > { %v524_v15 = vpop.f32.mrf.mxu2  ;;  %v550_v16 = vpop.f32.mrf.mxu3 }
 0x1a4   : > { %v525_v40 = vadd.f32 %v524_v15, %v503_v31  ;;  %v551_v41 = vadd.f32 %v550_v16, %v504_v32 }
 0x1a6   : > { %v559_v50 = vmax.f32 %v525_v40, 0.0  ;;  %v560_v51 = vmax.f32 %v551_v41, 0.0 }
 0x1ab   : > { %v527_v26 = vpop.f32.mrf.mxu2  ;;  %v553_v27 = vpop.f32.mrf.mxu3 }
 0x1ac   : > { %v528_v36 = vadd.f32 %v527_v26, %v503_v31  ;;  %v554_v37 = vadd.f32 %v553_v27, %v504_v32 }
 0x1ae   : > { %v561_v44 = vmax.f32 %v528_v36, 0.0  ;;  %v562_v45 = vmax.f32 %v554_v37, 0.0 }
 0x1b0   : > { %v566_v54 = vadd.f32 %v561_v44, %v559_v50  ;;  %v574_v55 = vadd.f32 %v562_v45, %v560_v51 }
 0x1b3   : > { %v530_v46 = vpop.f32.mrf.mxu2  ;;  %v556_v47 = vpop.f32.mrf.mxu3 }
 0x1b4   : > { %v531_v52 = vadd.f32 %v530_v46, %v503_v31  ;;  %v557_v53 = vadd.f32 %v556_v47, %v504_v32 }
 0x1b6   : > { %v563_v56 = vmax.f32 %v531_v52, 0.0  ;;  %v564_v57 = vmax.f32 %v557_v53, 0.0 }
 0x1b8   : > { %v567_v58 = vadd.f32 %v566_v54, %v563_v56  ;;  %v575_v59 = vadd.f32 %v574_v55, %v564_v57 }
 0x1ba   : > { %v568_v60 = vrot.slane %v567_v58, 4  ;;  %v576_v61 = vrot.slane %v575_v59, 4 }
 0x1bc   : > { %v569_v62 = vadd.f32 %v568_v60, %v567_v58  ;;  %v577_v63 = vadd.f32 %v576_v61, %v575_v59 }
 0x1be   : > { %v570_v0 = vrot.slane %v569_v62, 2  ;;  %v578_v1 = vrot.slane %v577_v63, 2 }
 0x1c0   : > { %v571_v2 = vadd.f32 %v570_v0, %v569_v62  ;;  %v579_v3 = vadd.f32 %v578_v1, %v577_v63 }
 0x1c2   : > { %v572_v4 = vrot.slane %v571_v2, 1  ;;  %v580_v5 = vrot.slane %v579_v3, 1 }
 0x1c4   : > { %v581_v6 = vadd.f32 %v580_v5, %v579_v3  ;;  %v573_v7 = vadd.f32 %v572_v4, %v571_v2 }
 0x1c6   : > { %v584_v9 = vrot.slane %v581_v6, 7 }
 0x1c8   : > { %v586_v10 = vsel %vm585_vm4, %v573_v7, %v584_v9 }
 0x1c9   : > { %v588_v12 = vadd.f32 %v586_v10, %v565_v8 }
 0x1cb   : > { %593 = vst.msk [vmem:[#allocation2] sm:$0x3] %vm1188_vm3, %v588_v12 }
 0x1d2   : > { %v597_v13 = vld [vmem:[#allocation2] sm:$0x3] }
 0x1d3   : > { %v598_v14 = vmul.f32 0.041666668, %v597_v13 }
 0x1d5   : > { %v633_v15 = vperm.slane %v598_v14, 0  ;;  %v634_v16 = vperm.slane %v598_v14, 1 }
 0x1d7   : > { %653 = vmatmul.f32.vlgmr.msrb.gmra.mxu0 %v633_v15  ;;  %673 = vmatmul.f32.vlgmr.msrb.gmra.mxu1 %v634_v16 }
 0x254   : > { %v654_v18 = vpop.f32.mrf.mxu0  ;;  %v674_v19 = vpop.f32.mrf.mxu1 }
 0x255   : > { %v655_v11 = vadd.f32 %v654_v18, %v631_v17 }
 0x257   : > { %v675_v20 = vadd.f32 %v674_v19, %v655_v11 }
 0x259   : > { %678 = vst.msk [vmem:[%s347_s15] sm:$0x1] %vm677_vm5, %v675_v20 }
 0x25a   : > { %862 = shalt.err (!%p859_p5)
}
 0x25b   : > { %777 = dma.vmem_to_hbm [thread:$0]  (%p1006_p4), %s691_s16, 16, %s693_s1, %s680_s18  }
 0x25c PF: > { %p783_p6 = scmp.ge.s32.totalorder %s913_s14, 2  ;;  %s704_s24 = sand.u32 1, %s893_s30  }
 0x25d   : > { %s705_s29 = scalar_lea.sflag [#allocation4], %s704_s24 }
 0x25e   : > { %p780_p7 = pnand %p783_p6, %p1013_p8 }
 0x260   : > { %p781_p9 = pneg %p780_p7 }
 0x262   : > { %888 = dma.done.wait (%p781_p9), %s705_s29, 16  }
 0x263   : > { %890 = vsyncadd (%p781_p9), %s705_s29, 4294967280  ;;  %s22_s14 = sadd.s32 1, %s913_s14   ;;  %s1321_s30 = smov %s897_s10 }
 0x264   : > { %p19_p10 = scmp.ge.s32.totalorder %s22_s14, 4   ;;  %s1322_s10 = smov %s901_s11 }
 0x265   : > { %s1323_s11 = smov %s1019_s22  ;;  %s1324_s12 = smov %s909_s13 }
 0x266   : > { %s1325_s13 = smov %s1327_s17  ;;  %21 = sbr.rel (!%p19_p10) target bundleno = 6 (0x6), region = 99 }
 0x26b   :  { %710 = vsyncpa [#allocation4], 1 }
 0x26c   :  { %712 = vsyncpa [#allocation4 + $0x1], 1 }

</bundles_post_ra>
